<compile_context>
chip_gen: v6e
topology: v6e:2x2x1
jax: 0.10.0
libtpu: 0.0.40
codegen_flags: <defaults>
</compile_context>

<pallas_src>
import functools

import jax
import jax.numpy as jnp
from jax.experimental import pallas as pl
from jax.experimental.pallas import tpu as pltpu

BIG = 1e30     # "no same-graph neighbour" sentinel distance^2 (keep in f32)
TM = 128       # row-atom tile (sublanes)
TKI = 512      # in-kernel column-atom chunk (lanes) pulled from the resident slab
LANES = 128    # vreg lane width == lane-dense accumulator width


def _pad_rows(x, mult, value=0.0):
    n = x.shape[0]
    npad = (-n) % mult
    if npad == 0:
        return x
    pad_width = [(0, npad)] + [(0, 0)] * (x.ndim - 1)
    return jnp.pad(x, pad_width, constant_values=value)


# ---------------------------------------------------------------------------
# Kernel: per atom of X, is there a same-graph atom of Y within `cutoff`?
# ---------------------------------------------------------------------------
def _interface_atom_kernel(pa_ref, pbT_ref, out_ref, *, cutoff_sq):
    # pa_ref : (TM, 8)             augmented X coords for this row tile
    #                              (col 5 = graph id as float)
    # pbT_ref: (n_chunks, 8, TKI)  augmented, pre-transposed, fully resident Y
    #                              (row 6 = graph id as float)
    # out_ref: (TM, 1) int32       1 if nearest same-graph Y atom is < cutoff
    pa = pa_ref[...]                                     # (TM, 8)
    ga = pa[:, 5:6]                                      # (TM, 1) graph id (f32)
    n_chunks = pbT_ref.shape[0]

    def body(c, acc):                                    # acc: (TM, LANES) f32
        pbT = pbT_ref[c]                                 # (8, TKI)
        gb = pbT[6:7, :]                                 # (1, TKI) graph id (f32)
        # |a-b|^2 in one MXU matmul (augmented coordinates; gid columns pair
        # with zero columns and contribute nothing).
        d2 = jnp.dot(pa, pbT, preferred_element_type=jnp.float32)   # (TM, TKI)
        d2 = jnp.where(ga == gb, d2, BIG)
        # Lane-dense accumulation: fold the TKI lanes onto 128 lanes with
        # elementwise mins (full-width VPU, no per-step XLU reduce).
        for k in range(TKI // LANES):
            acc = jnp.minimum(acc, d2[:, k * LANES:(k + 1) * LANES])
        return acc

    acc0 = jnp.full((pa.shape[0], LANES), BIG, jnp.float32)
    # Bounded unroll: enough for LLO scheduling, no code-size blowup when the
    # resident Y slab spans hundreds of chunks.
    acc = jax.lax.fori_loop(0, n_chunks, body, acc0,
                            unroll=min(n_chunks, 8))

    # Epilogue (once per row tile): cross-lane reduce + fused cutoff test.
    min_d2 = jnp.min(acc, axis=-1, keepdims=True)        # (TM, 1)
    out_ref[...] = (min_d2 < cutoff_sq).astype(jnp.int32)


def interface_atom_pallas(pos_a, gid_a, pos_b, gid_b, cutoff):
    """int32 flag per atom of A: 1 iff nearest same-graph atom of B is < cutoff."""
    na = pos_a.shape[0]
    nb = pos_b.shape[0]
    pos_a = pos_a.astype(jnp.float32)
    pos_b = pos_b.astype(jnp.float32)
    gid_a_f = gid_a.astype(jnp.float32)[:, None]                         # (na, 1)
    gid_b_f = gid_b.astype(jnp.float32)[:, None]                         # (nb, 1)

    a2 = jnp.sum(pos_a * pos_a, axis=-1, keepdims=True)                  # (na, 1)
    b2 = jnp.sum(pos_b * pos_b, axis=-1, keepdims=True)                  # (nb, 1)

    na_p = na + (-na) % TM
    nb_p = nb + (-nb) % TKI

    # Augmented coordinates so that pa_aug @ pb_aug^T == |a-b|^2.
    # Graph ids are packed into the otherwise-zero columns (int ids < 2^24 are
    # exact in f32, so the equality test in-kernel is exact).
    # Padded X -> gid -2, padded Y -> gid -1 (never match real non-negative ids).
    pa_aug = jnp.concatenate([
        _pad_rows(-2.0 * pos_a, TM),                     # cols 0..2
        _pad_rows(jnp.ones((na, 1), jnp.float32), TM),   # col 3
        _pad_rows(a2, TM),                               # col 4
        _pad_rows(gid_a_f, TM, value=-2.0),              # col 5 (gid_a)
        jnp.zeros((na_p, 2), jnp.float32)], axis=1)      # cols 6..7
    pb_aug = jnp.concatenate([
        _pad_rows(pos_b, TKI),                           # cols 0..2
        _pad_rows(b2, TKI),                              # col 3
        _pad_rows(jnp.ones((nb, 1), jnp.float32), TKI),  # col 4
        jnp.zeros((nb_p, 1), jnp.float32),               # col 5
        _pad_rows(gid_b_f, TKI, value=-1.0),             # col 6 (gid_b)
        jnp.zeros((nb_p, 1), jnp.float32)], axis=1)      # col 7

    n_chunks = nb_p // TKI

    # Pre-transpose Y chunks in the wrapper (cheap XLA op) so the kernel does a
    # plain (TM,8)x(8,TKI) MXU matmul with no in-kernel transpose.
    pbT = pb_aug.reshape(n_chunks, TKI, 8).transpose(0, 2, 1)            # (c, 8, TKI)

    kernel = functools.partial(_interface_atom_kernel,
                               cutoff_sq=float(cutoff) * float(cutoff))

    out = pl.pallas_call(
        kernel,
        out_shape=jax.ShapeDtypeStruct((na_p, 1), jnp.int32),
        grid_spec=pltpu.PrefetchScalarGridSpec(
            num_scalar_prefetch=0,
            grid=(na_p // TM,),
            in_specs=[
                pl.BlockSpec((TM, 8), lambda i: (i, 0)),                # X tile
                pl.BlockSpec((n_chunks, 8, TKI), lambda i: (0, 0, 0)),  # Y resident
            ],
            out_specs=pl.BlockSpec((TM, 1), lambda i: (i, 0)),
        ),
        compiler_params=pltpu.CompilerParams(
            dimension_semantics=("parallel",),
            vmem_limit_bytes=64 * 1024 * 1024),
    )(pa_aug, pbT)
    return out[:na, 0]


# ---------------------------------------------------------------------------
# InterfaceGraph.forward
# ---------------------------------------------------------------------------
def interface_graph_forward(node_position, node2graph, atom2residue,
                            entity_a_idx, entity_b_idx, is_mutation,
                            cutoff=10.0):
    num_node = node_position.shape[0]

    # Center coordinates (translation-invariant) to keep |a|^2+|b|^2-2ab accurate.
    pos = node_position.astype(jnp.float32)
    pos = pos - jnp.mean(pos, axis=0, keepdims=True)

    # graph.subgraph(entity_a) / graph.subgraph(entity_b): gather per-entity attrs.
    pos_a, pos_b = pos[entity_a_idx], pos[entity_b_idx]
    gid_a, gid_b = node2graph[entity_a_idx], node2graph[entity_b_idx]
    res_a, res_b = atom2residue[entity_a_idx], atom2residue[entity_b_idx]

    def get_interface(pos_x, gid_x, res_x, pos_y, gid_y):
        # nearest() + norm + `< cutoff`, fused in one Pallas kernel.
        is_if_atom = interface_atom_pallas(pos_x, gid_x, pos_y, gid_y, cutoff)
        # scatter_max over atom2residue + gather back == per-residue "any".
        per_res = jax.ops.segment_max(is_if_atom, res_x, num_segments=num_node)
        return per_res[res_x] > 0

    interface_mask_a = get_interface(pos_a, gid_a, res_a, pos_b, gid_b)
    interface_mask_b = get_interface(pos_b, gid_b, res_b, pos_a, gid_a)

    mask = jnp.zeros((num_node,), dtype=bool)
    mask = mask.at[entity_a_idx].set(interface_mask_a)
    mask = mask.at[entity_b_idx].set(interface_mask_b)
    mask = mask | is_mutation                            # mask[graph.is_mutation] = 1
    # TODO(synk): graph.subgraph(mask) / graph.subresidue(mask) produce a
    # dynamically-shaped graph object; we return the boolean node-selection mask.
    return mask


# ---------------------------------------------------------------------------
# Pure-JAX reference (for correctness check only)
# ---------------------------------------------------------------------------
def _reference_forward(node_position, node2graph, atom2residue,
                       entity_a_idx, entity_b_idx, is_mutation, cutoff):
    pos = node_position.astype(jnp.float32)
    num_node = pos.shape[0]

    def get_if(ix, iy):
        pa, pb = pos[ix], pos[iy]
        ga, gb = node2graph[ix], node2graph[iy]
        ra = atom2residue[ix]
        d2 = jnp.sum((pa[:, None, :] - pb[None, :, :]) ** 2, axis=-1)
        d2 = jnp.where(ga[:, None] == gb[None, :], d2, jnp.inf)
        is_if = jnp.sqrt(jnp.min(d2, axis=1)) < cutoff
        per_res = jax.ops.segment_max(is_if.astype(jnp.int32), ra,
                                      num_segments=num_node)
        return per_res[ra] > 0

    ma = get_if(entity_a_idx, entity_b_idx)
    mb = get_if(entity_b_idx, entity_a_idx)
    mask = jnp.zeros((num_node,), dtype=bool)
    mask = mask.at[entity_a_idx].set(ma)
    mask = mask.at[entity_b_idx].set(mb)
    return mask | is_mutation


if __name__ == "__main__":
    key = jax.random.PRNGKey(0)
    num_graphs = 2
    atoms_per_graph = 32
    N = num_graphs * atoms_per_graph                     # 64 atoms total
    node_position = jax.random.uniform(key, (N, 3), minval=0.0, maxval=25.0,
                                       dtype=jnp.float32)
    node2graph = jnp.repeat(jnp.arange(num_graphs, dtype=jnp.int32),
                            atoms_per_graph)
    atom2residue = jnp.arange(N, dtype=jnp.int32) // 4   # 4 atoms per residue
    is_entity_a = (jnp.arange(N) % atoms_per_graph) < (atoms_per_graph // 2)
    entity_a_idx = jnp.nonzero(is_entity_a, size=N // 2)[0]
    entity_b_idx = jnp.nonzero(~is_entity_a, size=N // 2)[0]
    is_mutation = jnp.zeros((N,), dtype=bool).at[jnp.array([0, 40])].set(True)

    mask = interface_graph_forward(node_position, node2graph, atom2residue,
                                   entity_a_idx, entity_b_idx, is_mutation,
                                   cutoff=10.0)
    mask = jax.block_until_ready(mask)
    assert mask.shape == (N,) and mask.dtype == jnp.bool_

    ref = _reference_forward(node_position, node2graph, atom2residue,
                             entity_a_idx, entity_b_idx, is_mutation,
                             cutoff=10.0)
    assert bool(jnp.array_equal(mask, ref)), "mask mismatch vs pure-JAX reference"
    print("KERNEL_OK")
</pallas_src>

<mosaic_0001>
module attributes {stable_mosaic.version = 11 : i64} {
  func.func @_interface_atom_kernel(%arg0: i32, %arg1: memref<128x8xf32, #tpu.memory_space<vmem>>, %arg2: memref<1x8x512xf32, #tpu.memory_space<vmem>>, %arg3: memref<128x1xi32, #tpu.memory_space<vmem>>) attributes {dimension_semantics = [#tpu.dimension_semantics<parallel>], iteration_bounds = array<i64: 1>, scalar_prefetch = 0 : i64, scratch_operands = 0 : i64, tpu.core_type = #tpu.core_type<tc>, window_params = [{transform_indices = @transform_0, window_bounds = array<i64: 128, 8>}, {pipeline_mode = #tpu.pipeline_mode<synchronous>, transform_indices = @transform_1, window_bounds = array<i64: 1, 8, 512>}, {transform_indices = @transform_2, window_bounds = array<i64: 128, 1>}]} {
    %c0 = arith.constant 0 : index
    %c0_0 = arith.constant 0 : index
    %0 = vector.load %arg1[%c0, %c0_0] : memref<128x8xf32, #tpu.memory_space<vmem>>, vector<128x8xf32>
    %1 = vector.extract_strided_slice %0 {offsets = [0, 5], sizes = [128, 1], strides = [1, 1]} : vector<128x8xf32> to vector<128x1xf32>
    %cst = arith.constant 1.000000e+30 : f32
    %2 = vector.broadcast %cst : f32 to vector<128x128xf32>
    %c0_i32 = arith.constant 0 : i32
    %3 = arith.index_cast %c0_i32 : i32 to index
    %c0_1 = arith.constant 0 : index
    %c0_2 = arith.constant 0 : index
    %4 = vector.load %arg2[%3, %c0_1, %c0_2] : memref<1x8x512xf32, #tpu.memory_space<vmem>>, vector<1x8x512xf32>
    %5 = vector.shape_cast %4 : vector<1x8x512xf32> to vector<8x512xf32>
    %6 = vector.extract_strided_slice %5 {offsets = [6, 0], sizes = [1, 512], strides = [1, 1]} : vector<8x512xf32> to vector<1x512xf32>
    %cst_3 = arith.constant dense<0.000000e+00> : vector<128x512xf32>
    %7 = tpu.matmul %0, %5, %cst_3 {dimension_numbers = #tpu.dot_dimension_numbers<[1], [0], [0], [1], [0, 0, 1, 1], [], []>} : vector<128x8xf32>, vector<8x512xf32>, vector<128x512xf32> -> vector<128x512xf32>
    %8 = vector.broadcast %1 : vector<128x1xf32> to vector<128x512xf32>
    %9 = vector.broadcast %6 : vector<1x512xf32> to vector<128x512xf32>
    %10 = arith.cmpf oeq, %8, %9 : vector<128x512xf32>
    %cst_4 = arith.constant 1.000000e+30 : f32
    %11 = vector.broadcast %cst_4 : f32 to vector<128x512xf32>
    %12 = arith.select %10, %7, %11 : vector<128x512xi1>, vector<128x512xf32>
    %13 = vector.extract_strided_slice %12 {offsets = [0, 0], sizes = [128, 128], strides = [1, 1]} : vector<128x512xf32> to vector<128x128xf32>
    %14 = arith.minimumf %2, %13 : vector<128x128xf32>
    %15 = vector.extract_strided_slice %12 {offsets = [0, 128], sizes = [128, 128], strides = [1, 1]} : vector<128x512xf32> to vector<128x128xf32>
    %16 = arith.minimumf %14, %15 : vector<128x128xf32>
    %17 = vector.extract_strided_slice %12 {offsets = [0, 256], sizes = [128, 128], strides = [1, 1]} : vector<128x512xf32> to vector<128x128xf32>
    %18 = arith.minimumf %16, %17 : vector<128x128xf32>
    %19 = vector.extract_strided_slice %12 {offsets = [0, 384], sizes = [128, 128], strides = [1, 1]} : vector<128x512xf32> to vector<128x128xf32>
    %20 = arith.minimumf %18, %19 : vector<128x128xf32>
    %c1_i32 = arith.constant 1 : i32
    %cst_5 = arith.constant dense<0x7F800000> : vector<128xf32>
    %21 = vector.multi_reduction <minimumf>, %20, %cst_5 [1] : vector<128x128xf32> to vector<128xf32>
    %22 = vector.shape_cast %21 : vector<128xf32> to vector<128x1xf32>
    %cst_6 = arith.constant 1.000000e+02 : f32
    %23 = vector.broadcast %cst_6 : f32 to vector<128x1xf32>
    %24 = arith.cmpf olt, %22, %23 : vector<128x1xf32>
    %25 = arith.extui %24 : vector<128x1xi1> to vector<128x1xi32>
    %c0_7 = arith.constant 0 : index
    %c0_8 = arith.constant 0 : index
    %26 = vector.load %arg3[%c0_7, %c0_8] : memref<128x1xi32, #tpu.memory_space<vmem>>, vector<128x1xi32>
    tpu.vector_store %arg3[%c0_7, %c0_8], %25 {strides = array<i32>} : memref<128x1xi32, #tpu.memory_space<vmem>>, vector<128x1xi32>,
    return
  }
  func.func @transform_0(%arg0: i32) -> (i32, i32) {
    %c0_i32 = arith.constant 0 : i32
    %c0_i32_0 = arith.constant 0 : i32
    return %arg0, %c0_i32 : i32, i32
  }
  func.func @transform_1(%arg0: i32) -> (i32, i32, i32) {
    %c0_i32 = arith.constant 0 : i32
    %c0_i32_0 = arith.constant 0 : i32
    %c0_i32_1 = arith.constant 0 : i32
    %c0_i32_2 = arith.constant 0 : i32
    return %c0_i32, %c0_i32_0, %c0_i32_1 : i32, i32, i32
  }
  func.func @transform_2(%arg0: i32) -> (i32, i32) {
    %c0_i32 = arith.constant 0 : i32
    %c0_i32_0 = arith.constant 0 : i32
    return %arg0, %c0_i32 : i32, i32
  }
}

</mosaic_0001>

<bundles_post_ra>
// kernel: tpu_custom_call.1
= control target key start
LH: loop header
LB: loop body
LE: loop exit
PB: predicated region body
PF: predicated region fallthrough
CT: control target
= control target key end

     0   :  { %v796_v3 = vmov 0.0   ;;  %vm31_vm0 = vcmask 64512   ;;  %v797_v7 = vmov 5   ;;  %v466_v22 = vlaneseq  ;;  %s1100_s1 = inlined_call_operand.vmem [shape: f32[1,8,512], index: 1, kind: input, shape index: {}]   ;;  %s1101_s0 = inlined_call_operand.vmem [shape: f32[128,8], index: 0, kind: input, shape index: {}]   ;;  %s1102_s2 = inlined_call_operand.vmem [shape: s32[128,1], index: 2, kind: output, shape index: {}]  }
   0x1   :  { %v817_v0 = vld [vmem:[%s1100_s1 + $0x8] sm:$0xff]  ;;  %v822_v1 = vld [vmem:[%s1100_s1 + $0x18] sm:$0xff]  ;;  %v827_v2 = vld [vmem:[%s1100_s1] sm:$0xff]  ;;  %144 = vmatprep.mubr.f32.mxu0 %v796_v3  ;;  %305 = vmatprep.mubr.f32.mxu1 %v796_v3 }
   0x2   :  { %110 = vmatprep.subr.mxu0 %v817_v0  ;;  %271 = vmatprep.subr.mxu1 %v822_v1  ;;  %v836_v4 = vld [vmem:[%s1100_s1 + $0x10] sm:$0xff]  ;;  %v11_v5 = vld [vmem:[%s1101_s0] sm:$0xff]  ;;  %v12_v6 = vld [vmem:[%s1101_s0 + $0x8] sm:$0xff]  ;;  %v467_v23 = vshrl.u32 %v466_v22, 7 }
   0x3   :  { %111 = vmatpush1.msra.mxu0 %v827_v2  ;;  %272 = vmatpush1.msra.mxu1 %v836_v4  ;;  %v13_v8 = vld [vmem:[%s1101_s0 + $0x10] sm:$0xff]  ;;  %v14_v9 = vld [vmem:[%s1101_s0 + $0x18] sm:$0xff]  ;;  %v15_v10 = vld [vmem:[%s1101_s0 + $0x20] sm:$0xff] }
   0x4   :  { %759 = vmatmul.mubr.msk.f32.vlgmr.msra.gmra.mxu0 %vm31_vm0, %v11_v5  ;;  %775 = vmatmul.mubr.msk.f32.vlgmr.msra.gmra.mxu1 %vm31_vm0, %v11_v5  ;;  %v16_v11 = vld [vmem:[%s1101_s0 + $0x28] sm:$0xff]  ;;  %v17_v12 = vld [vmem:[%s1101_s0 + $0x30] sm:$0xff]  ;;  %v18_v13 = vld [vmem:[%s1101_s0 + $0x38] sm:$0xff]  ;;  %v468_v24 = vsub.s32 6, %v467_v23 }
   0x5   :  { %150 = vmatprep.mubr.f32.mxu0 %v796_v3  ;;  %311 = vmatprep.mubr.f32.mxu1 %v796_v3  ;;  %v19_v14 = vld [vmem:[%s1101_s0 + $0x40] sm:$0xff]  ;;  %v20_v15 = vld [vmem:[%s1101_s0 + $0x48] sm:$0xff]  ;;  %v21_v16 = vld [vmem:[%s1101_s0 + $0x50] sm:$0xff] }
   0x6   :  { %794 = vset.pattern.permute.xlu0 %v797_v7  ;;  %795 = vset.pattern.permute.xlu1 %v797_v7  ;;  %v22_v17 = vld [vmem:[%s1101_s0 + $0x58] sm:$0xff]  ;;  %v23_v18 = vld [vmem:[%s1101_s0 + $0x60] sm:$0xff]  ;;  %v24_v19 = vld [vmem:[%s1101_s0 + $0x68] sm:$0xff]  ;;  %v951_v26 = vrot.slane %v827_v2, %v468_v24  ;;  %v954_v27 = vrot.slane %v817_v0, %v468_v24  ;;  %v957_v28 = vrot.slane %v836_v4, %v468_v24 }
   0x7   :  { %403 = vperm.xlu0 %794, %v11_v5   ;;  %411 = vperm.xlu1 %795, %v13_v8   ;;  %v25_v20 = vld [vmem:[%s1101_s0 + $0x70] sm:$0xff]  ;;  %v26_v21 = vld [vmem:[%s1101_s0 + $0x78] sm:$0xff]  ;;  %v961_v30 = vrot.slane %v822_v1, %v468_v24 }
   0x8   :  { %760 = vmatmul.mubr.msk.f32.gmra.mxu0 %vm31_vm0, %v12_v6  ;;  %776 = vmatmul.mubr.msk.f32.gmra.mxu1 %vm31_vm0, %v12_v6 }
   0x9   :  { %156 = vmatprep.mubr.f32.mxu0 %v796_v3  ;;  %317 = vmatprep.mubr.f32.mxu1 %v796_v3 }
   0xb   :  { %407 = vperm.xlu0 %794, %v12_v6   ;;  %415 = vperm.xlu1 %795, %v14_v9  }
   0xc   :  { %761 = vmatmul.mubr.msk.f32.gmra.mxu0 %vm31_vm0, %v13_v8  ;;  %777 = vmatmul.mubr.msk.f32.gmra.mxu1 %vm31_vm0, %v13_v8 }
   0xd   :  { %162 = vmatprep.mubr.f32.mxu0 %v796_v3  ;;  %323 = vmatprep.mubr.f32.mxu1 %v796_v3 }
   0xf   :  { %419 = vperm.xlu0 %794, %v15_v10   ;;  %423 = vperm.xlu1 %795, %v16_v11  }
  0x10   :  { %762 = vmatmul.mubr.msk.f32.gmra.mxu0 %vm31_vm0, %v14_v9  ;;  %778 = vmatmul.mubr.msk.f32.gmra.mxu1 %vm31_vm0, %v14_v9 }
  0x11   :  { %168 = vmatprep.mubr.f32.mxu0 %v796_v3  ;;  %329 = vmatprep.mubr.f32.mxu1 %v796_v3 }
  0x13   :  { %427 = vperm.xlu0 %794, %v17_v12   ;;  %431 = vperm.xlu1 %795, %v18_v13  }
  0x14   :  { %763 = vmatmul.mubr.msk.f32.gmra.mxu0 %vm31_vm0, %v15_v10  ;;  %779 = vmatmul.mubr.msk.f32.gmra.mxu1 %vm31_vm0, %v15_v10 }
  0x15   :  { %174 = vmatprep.mubr.f32.mxu0 %v796_v3  ;;  %335 = vmatprep.mubr.f32.mxu1 %v796_v3 }
  0x17   :  { %435 = vperm.xlu0 %794, %v19_v14   ;;  %439 = vperm.xlu1 %795, %v20_v15  }
  0x18   :  { %764 = vmatmul.mubr.msk.f32.gmra.mxu0 %vm31_vm0, %v16_v11  ;;  %780 = vmatmul.mubr.msk.f32.gmra.mxu1 %vm31_vm0, %v16_v11 }
  0x19   :  { %180 = vmatprep.mubr.f32.mxu0 %v796_v3  ;;  %341 = vmatprep.mubr.f32.mxu1 %v796_v3 }
  0x1b   :  { %443 = vperm.xlu0 %794, %v21_v16   ;;  %447 = vperm.xlu1 %795, %v22_v17  }
  0x1c   :  { %765 = vmatmul.mubr.msk.f32.gmra.mxu0 %vm31_vm0, %v17_v12  ;;  %781 = vmatmul.mubr.msk.f32.gmra.mxu1 %vm31_vm0, %v17_v12 }
  0x1d   :  { %186 = vmatprep.mubr.f32.mxu0 %v796_v3  ;;  %347 = vmatprep.mubr.f32.mxu1 %v796_v3 }
  0x1f   :  { %451 = vperm.xlu0 %794, %v23_v18   ;;  %455 = vperm.xlu1 %795, %v24_v19  }
  0x20   :  { %766 = vmatmul.mubr.msk.f32.gmra.mxu0 %vm31_vm0, %v18_v13  ;;  %782 = vmatmul.mubr.msk.f32.gmra.mxu1 %vm31_vm0, %v18_v13 }
  0x21   :  { %192 = vmatprep.mubr.f32.mxu0 %v796_v3  ;;  %353 = vmatprep.mubr.f32.mxu1 %v796_v3 }
  0x23   :  { %459 = vperm.xlu0 %794, %v25_v20   ;;  %463 = vperm.xlu1 %795, %v26_v21  }
  0x24   :  { %767 = vmatmul.mubr.msk.f32.gmra.mxu0 %vm31_vm0, %v19_v14  ;;  %783 = vmatmul.mubr.msk.f32.gmra.mxu1 %vm31_vm0, %v19_v14 }
  0x25   :  { %198 = vmatprep.mubr.f32.mxu0 %v796_v3  ;;  %359 = vmatprep.mubr.f32.mxu1 %v796_v3 }
  0x28   :  { %768 = vmatmul.mubr.msk.f32.gmra.mxu0 %vm31_vm0, %v20_v15  ;;  %784 = vmatmul.mubr.msk.f32.gmra.mxu1 %vm31_vm0, %v20_v15 }
  0x29   :  { %204 = vmatprep.mubr.f32.mxu0 %v796_v3  ;;  %365 = vmatprep.mubr.f32.mxu1 %v796_v3 }
  0x2c   :  { %769 = vmatmul.mubr.msk.f32.gmra.mxu0 %vm31_vm0, %v21_v16  ;;  %785 = vmatmul.mubr.msk.f32.gmra.mxu1 %vm31_vm0, %v21_v16 }
  0x2d   :  { %210 = vmatprep.mubr.f32.mxu0 %v796_v3  ;;  %371 = vmatprep.mubr.f32.mxu1 %v796_v3 }
  0x30   :  { %770 = vmatmul.mubr.msk.f32.gmra.mxu0 %vm31_vm0, %v22_v17  ;;  %786 = vmatmul.mubr.msk.f32.gmra.mxu1 %vm31_vm0, %v22_v17 }
  0x31   :  { %216 = vmatprep.mubr.f32.mxu0 %v796_v3  ;;  %377 = vmatprep.mubr.f32.mxu1 %v796_v3 }
  0x34   :  { %771 = vmatmul.mubr.msk.f32.gmra.mxu0 %vm31_vm0, %v23_v18  ;;  %787 = vmatmul.mubr.msk.f32.gmra.mxu1 %vm31_vm0, %v23_v18 }
  0x35   :  { %222 = vmatprep.mubr.f32.mxu0 %v796_v3  ;;  %383 = vmatprep.mubr.f32.mxu1 %v796_v3 }
  0x38   :  { %772 = vmatmul.mubr.msk.f32.gmra.mxu0 %vm31_vm0, %v24_v19  ;;  %788 = vmatmul.mubr.msk.f32.gmra.mxu1 %vm31_vm0, %v24_v19 }
  0x39   :  { %228 = vmatprep.mubr.f32.mxu0 %v796_v3  ;;  %389 = vmatprep.mubr.f32.mxu1 %v796_v3 }
  0x3c   :  { %773 = vmatmul.mubr.msk.f32.gmra.mxu0 %vm31_vm0, %v25_v20  ;;  %789 = vmatmul.mubr.msk.f32.gmra.mxu1 %vm31_vm0, %v25_v20 }
  0x3d   :  { %234 = vmatprep.mubr.f32.mxu0 %v796_v3  ;;  %395 = vmatprep.mubr.f32.mxu1 %v796_v3 }
  0x40   :  { %774 = vmatmul.mubr.msk.f32.gmra.mxu0 %vm31_vm0, %v26_v21  ;;  %790 = vmatmul.mubr.msk.f32.gmra.mxu1 %vm31_vm0, %v26_v21 }
  0x82   :  { %v404_v25 = vpop.permute.xlu0 %403  ;;  %v412_v39 = vpop.permute.xlu1 %411 }
  0x83   :  { %vm482_vm1 = vcmp.eq.f32.partialorder %v404_v25, %v951_v26  ;;  %vm484_vm2 = vcmp.eq.f32.partialorder %v404_v25, %v957_v28  ;;  %vm483_vm3 = vcmp.eq.f32.partialorder %v404_v25, %v954_v27  ;;  %vm485_vm5 = vcmp.eq.f32.partialorder %v404_v25, %v961_v30 }
  0x84   :  { %vm490_vm8 = vcmp.eq.f32.partialorder %v412_v39, %v951_v26  ;;  %vm492_vm9 = vcmp.eq.f32.partialorder %v412_v39, %v957_v28  ;;  %vm491_vm11 = vcmp.eq.f32.partialorder %v412_v39, %v954_v27  ;;  %vm493_vm13 = vcmp.eq.f32.partialorder %v412_v39, %v961_v30 }
  0x86   :  { %v408_v29 = vpop.permute.xlu0 %407  ;;  %v416_v55 = vpop.permute.xlu1 %415 }
  0x87   :  { %vm486_vm4 = vcmp.eq.f32.partialorder %v408_v29, %v951_v26  ;;  %vm488_vm6 = vcmp.eq.f32.partialorder %v408_v29, %v957_v28  ;;  %vm487_vm7 = vcmp.eq.f32.partialorder %v408_v29, %v954_v27  ;;  %vm489_vm10 = vcmp.eq.f32.partialorder %v408_v29, %v961_v30 }
  0x88   :  { %vm494_vm12 = vcmp.eq.f32.partialorder %v416_v55, %v951_v26  ;;  %vm496_vm14 = vcmp.eq.f32.partialorder %v416_v55, %v957_v28  ;;  %vm495_vm15 = vcmp.eq.f32.partialorder %v416_v55, %v954_v27 }
  0x8a   :  { %v420_v4 = vpop.permute.xlu0 %419  ;;  %v424_v17 = vpop.permute.xlu1 %423 }
  0x8b   :  { %vm498_vm0 = vcmp.eq.f32.partialorder %v420_v4, %v951_v26 }
  0xc4   :  { %v146_v31 = vpop.f32.mrf.mxu0  ;;  %v307_v32 = vpop.f32.mrf.mxu1 }
  0xc5   :  { %v546_v33 = vsel %vm482_vm1, %v146_v31, 1e+30  ;;  %v548_v37 = vsel %vm484_vm2, %v307_v32, 1e+30  ;;  %vm497_vm1 = vcmp.eq.f32.partialorder %v416_v55, %v961_v30  ;;  %vm500_vm2 = vcmp.eq.f32.partialorder %v420_v4, %v957_v28 }
  0xc6   :  { %v610_v34 = vmin.f32 %v546_v33, 1e+30  ;;  %v148_v35 = vpop.f32.mrf.mxu0  ;;  %v309_v36 = vpop.f32.mrf.mxu1 }
  0xc7   :  { %v547_v38 = vsel %vm483_vm3, %v148_v35, 1e+30  ;;  %v549_v48 = vsel %vm485_vm5, %v309_v36, 1e+30  ;;  %vm499_vm3 = vcmp.eq.f32.partialorder %v420_v4, %v954_v27  ;;  %vm501_vm5 = vcmp.eq.f32.partialorder %v420_v4, %v961_v30 }
  0xc8   :  { %v626_v40 = vmin.f32 %v610_v34, %v547_v38  ;;  %v152_v41 = vpop.f32.mrf.mxu0  ;;  %v313_v42 = vpop.f32.mrf.mxu1 }
  0xc9   :  { %v550_v43 = vsel %vm486_vm4, %v152_v41, 1e+30  ;;  %v552_v49 = vsel %vm488_vm6, %v313_v42, 1e+30  ;;  %vm502_vm4 = vcmp.eq.f32.partialorder %v424_v17, %v951_v26  ;;  %vm504_vm6 = vcmp.eq.f32.partialorder %v424_v17, %v957_v28  ;;  %v428_v34 = vpop.permute.xlu0 %427 }
  0xca   :  { %v611_v44 = vmin.f32 %v550_v43, 1e+30  ;;  %v154_v45 = vpop.f32.mrf.mxu0  ;;  %v315_v46 = vpop.f32.mrf.mxu1  ;;  %v642_v47 = vmin.f32 %v626_v40, %v548_v37 }
  0xcb   :  { %v551_v50 = vsel %vm487_vm7, %v154_v45, 1e+30  ;;  %v553_v61 = vsel %vm489_vm10, %v315_v46, 1e+30  ;;  %vm503_vm7 = vcmp.eq.f32.partialorder %v424_v17, %v954_v27  ;;  %vm508_vm10 = vcmp.eq.f32.partialorder %v428_v34, %v957_v28 }
  0xcc   :  { %v627_v51 = vmin.f32 %v611_v44, %v551_v50  ;;  %v158_v52 = vpop.f32.mrf.mxu0  ;;  %v319_v53 = vpop.f32.mrf.mxu1  ;;  %v658_v54 = vmin.f32 %v642_v47, %v549_v48 }
  0xcd   :  { %v554_v56 = vsel %vm490_vm8, %v158_v52, 1e+30  ;;  %v556_v62 = vsel %vm492_vm9, %v319_v53, 1e+30  ;;  %vm506_vm8 = vcmp.eq.f32.partialorder %v428_v34, %v951_v26  ;;  %vm505_vm9 = vcmp.eq.f32.partialorder %v424_v17, %v961_v30  ;;  %v432_v47 = vpop.permute.xlu1 %431 }
  0xce   :  { %v612_v57 = vmin.f32 %v554_v56, 1e+30  ;;  %v321_v58 = vpop.f32.mrf.mxu1  ;;  %674 = vmin.xlane.f32.xlu0 %v658_v54  ;;  %v160_v59 = vpop.f32.mrf.mxu0  ;;  %v643_v60 = vmin.f32 %v627_v51, %v552_v49 }
  0xcf   :  { %v555_v63 = vsel %vm491_vm11, %v160_v59, 1e+30  ;;  %v557_v10 = vsel %vm493_vm13, %v321_v58, 1e+30  ;;  %vm507_vm11 = vcmp.eq.f32.partialorder %v428_v34, %v954_v27  ;;  %vm509_vm13 = vcmp.eq.f32.partialorder %v428_v34, %v961_v30 }
  0xd0   :  { %v628_v0 = vmin.f32 %v612_v57, %v555_v63  ;;  %v164_v1 = vpop.f32.mrf.mxu0  ;;  %v325_v2 = vpop.f32.mrf.mxu1  ;;  %v659_v3 = vmin.f32 %v643_v60, %v553_v61 }
  0xd1   :  { %v558_v5 = vsel %vm494_vm12, %v164_v1, 1e+30  ;;  %v560_v11 = vsel %vm496_vm14, %v325_v2, 1e+30  ;;  %vm510_vm12 = vcmp.eq.f32.partialorder %v432_v47, %v951_v26  ;;  %vm512_vm14 = vcmp.eq.f32.partialorder %v432_v47, %v957_v28  ;;  %v436_v1 = vpop.permute.xlu0 %435 }
  0xd2   :  { %v613_v6 = vmin.f32 %v558_v5, 1e+30  ;;  %v327_v7 = vpop.f32.mrf.mxu1  ;;  %676 = vmin.xlane.f32.xlu1 %v659_v3  ;;  %v166_v8 = vpop.f32.mrf.mxu0  ;;  %v644_v9 = vmin.f32 %v628_v0, %v556_v62 }
  0xd3   :  { %v559_v12 = vsel %vm495_vm15, %v166_v8, 1e+30  ;;  %v561_v23 = vsel %vm497_vm1, %v327_v7, 1e+30  ;;  %vm511_vm15 = vcmp.eq.f32.partialorder %v432_v47, %v954_v27  ;;  %vm514_vm1 = vcmp.eq.f32.partialorder %v436_v1, %v951_v26 }
  0xd4   :  { %v629_v13 = vmin.f32 %v613_v6, %v559_v12  ;;  %v170_v14 = vpop.f32.mrf.mxu0  ;;  %v331_v15 = vpop.f32.mrf.mxu1  ;;  %v660_v16 = vmin.f32 %v644_v9, %v557_v10 }
  0xd5   :  { %v562_v18 = vsel %vm498_vm0, %v170_v14, 1e+30  ;;  %v564_v24 = vsel %vm500_vm2, %v331_v15, 1e+30  ;;  %vm513_vm0 = vcmp.eq.f32.partialorder %v432_v47, %v961_v30  ;;  %vm515_vm2 = vcmp.eq.f32.partialorder %v436_v1, %v954_v27  ;;  %v440_v14 = vpop.permute.xlu1 %439 }
  0xd6   :  { %v614_v19 = vmin.f32 %v562_v18, 1e+30  ;;  %v333_v20 = vpop.f32.mrf.mxu1  ;;  %678 = vmin.xlane.f32.xlu0 %v660_v16  ;;  %v172_v21 = vpop.f32.mrf.mxu0  ;;  %v645_v22 = vmin.f32 %v629_v13, %v560_v11 }
  0xd7   :  { %v563_v25 = vsel %vm499_vm3, %v172_v21, 1e+30  ;;  %v565_v40 = vsel %vm501_vm5, %v333_v20, 1e+30  ;;  %vm516_vm3 = vcmp.eq.f32.partialorder %v436_v1, %v957_v28  ;;  %vm517_vm5 = vcmp.eq.f32.partialorder %v436_v1, %v961_v30 }
  0xd8   :  { %v630_v29 = vmin.f32 %v614_v19, %v563_v25  ;;  %v176_v31 = vpop.f32.mrf.mxu0  ;;  %v337_v32 = vpop.f32.mrf.mxu1  ;;  %v661_v33 = vmin.f32 %v645_v22, %v561_v23 }
  0xd9   :  { %v566_v35 = vsel %vm502_vm4, %v176_v31, 1e+30  ;;  %v568_v41 = vsel %vm504_vm6, %v337_v32, 1e+30  ;;  %vm518_vm4 = vcmp.eq.f32.partialorder %v440_v14, %v951_v26  ;;  %vm519_vm6 = vcmp.eq.f32.partialorder %v440_v14, %v954_v27  ;;  %v444_v31 = vpop.permute.xlu0 %443 }
  0xda   :  { %v615_v36 = vmin.f32 %v566_v35, 1e+30  ;;  %v339_v37 = vpop.f32.mrf.mxu1  ;;  %680 = vmin.xlane.f32.xlu0 %v661_v33  ;;  %v178_v38 = vpop.f32.mrf.mxu0  ;;  %v646_v39 = vmin.f32 %v630_v29, %v564_v24 }
  0xdb   :  { %v567_v42 = vsel %vm503_vm7, %v178_v38, 1e+30  ;;  %v569_v53 = vsel %vm505_vm9, %v339_v37, 1e+30  ;;  %vm520_vm7 = vcmp.eq.f32.partialorder %v440_v14, %v957_v28  ;;  %vm521_vm9 = vcmp.eq.f32.partialorder %v440_v14, %v961_v30 }
  0xdc   :  { %v631_v43 = vmin.f32 %v615_v36, %v567_v42  ;;  %v182_v44 = vpop.f32.mrf.mxu0  ;;  %v343_v45 = vpop.f32.mrf.mxu1  ;;  %v662_v46 = vmin.f32 %v646_v39, %v565_v40 }
  0xdd   :  { %v570_v48 = vsel %vm506_vm8, %v182_v44, 1e+30  ;;  %v572_v54 = vsel %vm508_vm10, %v343_v45, 1e+30  ;;  %vm522_vm8 = vcmp.eq.f32.partialorder %v444_v31, %v951_v26  ;;  %vm523_vm10 = vcmp.eq.f32.partialorder %v444_v31, %v954_v27  ;;  %v448_v44 = vpop.permute.xlu1 %447 }
  0xde   :  { %v616_v49 = vmin.f32 %v570_v48, 1e+30  ;;  %v345_v50 = vpop.f32.mrf.mxu1  ;;  %682 = vmin.xlane.f32.xlu1 %v662_v46  ;;  %v184_v51 = vpop.f32.mrf.mxu0  ;;  %v647_v52 = vmin.f32 %v631_v43, %v568_v41 }
  0xdf   :  { %v571_v55 = vsel %vm507_vm11, %v184_v51, 1e+30  ;;  %v573_v2 = vsel %vm509_vm13, %v345_v50, 1e+30  ;;  %vm524_vm11 = vcmp.eq.f32.partialorder %v444_v31, %v957_v28  ;;  %vm525_vm13 = vcmp.eq.f32.partialorder %v444_v31, %v961_v30 }
  0xe0   :  { %v632_v56 = vmin.f32 %v616_v49, %v571_v55  ;;  %v188_v57 = vpop.f32.mrf.mxu0  ;;  %v349_v58 = vpop.f32.mrf.mxu1  ;;  %v663_v59 = vmin.f32 %v647_v52, %v569_v53 }
  0xe1   :  { %v574_v60 = vsel %vm510_vm12, %v188_v57, 1e+30  ;;  %v576_v3 = vsel %vm512_vm14, %v349_v58, 1e+30  ;;  %vm526_vm12 = vcmp.eq.f32.partialorder %v448_v44, %v951_v26  ;;  %vm527_vm14 = vcmp.eq.f32.partialorder %v448_v44, %v954_v27  ;;  %v452_v57 = vpop.permute.xlu0 %451 }
  0xe2   :  { %v617_v61 = vmin.f32 %v574_v60, 1e+30  ;;  %v351_v62 = vpop.f32.mrf.mxu1  ;;  %684 = vmin.xlane.f32.xlu0 %v663_v59  ;;  %v190_v63 = vpop.f32.mrf.mxu0  ;;  %v648_v0 = vmin.f32 %v632_v56, %v572_v54 }
  0xe3   :  { %v575_v4 = vsel %vm511_vm15, %v190_v63, 1e+30  ;;  %v577_v15 = vsel %vm513_vm0, %v351_v62, 1e+30  ;;  %vm528_vm15 = vcmp.eq.f32.partialorder %v448_v44, %v957_v28  ;;  %vm530_vm0 = vcmp.eq.f32.partialorder %v452_v57, %v951_v26 }
  0xe4   :  { %v633_v5 = vmin.f32 %v617_v61, %v575_v4  ;;  %v194_v6 = vpop.f32.mrf.mxu0  ;;  %v355_v7 = vpop.f32.mrf.mxu1  ;;  %v664_v8 = vmin.f32 %v648_v0, %v573_v2 }
  0xe5   :  { %v578_v9 = vsel %vm514_vm1, %v194_v6, 1e+30  ;;  %v580_v21 = vsel %vm516_vm3, %v355_v7, 1e+30  ;;  %vm529_vm1 = vcmp.eq.f32.partialorder %v448_v44, %v961_v30  ;;  %v456_v6 = vpop.permute.xlu1 %455  ;;  %vm532_vm3 = vcmp.eq.f32.partialorder %v452_v57, %v957_v28 }
  0xe6   :  { %v618_v10 = vmin.f32 %v578_v9, 1e+30  ;;  %v357_v11 = vpop.f32.mrf.mxu1  ;;  %686 = vmin.xlane.f32.xlu1 %v664_v8  ;;  %v196_v12 = vpop.f32.mrf.mxu0  ;;  %v649_v13 = vmin.f32 %v633_v5, %v576_v3 }
  0xe7   :  { %v579_v16 = vsel %vm515_vm2, %v196_v12, 1e+30  ;;  %v581_v32 = vsel %vm517_vm5, %v357_v11, 1e+30  ;;  %vm531_vm2 = vcmp.eq.f32.partialorder %v452_v57, %v954_v27  ;;  %vm533_vm5 = vcmp.eq.f32.partialorder %v452_v57, %v961_v30 }
  0xe8   :  { %v634_v17 = vmin.f32 %v618_v10, %v579_v16  ;;  %v200_v18 = vpop.f32.mrf.mxu0  ;;  %v361_v19 = vpop.f32.mrf.mxu1  ;;  %v665_v20 = vmin.f32 %v649_v13, %v577_v15 }
  0xe9   :  { %v582_v22 = vsel %vm518_vm4, %v200_v18, 1e+30  ;;  %v584_v38 = vsel %vm520_vm7, %v361_v19, 1e+30  ;;  %vm534_vm4 = vcmp.eq.f32.partialorder %v456_v6, %v951_v26  ;;  %v460_v13 = vpop.permute.xlu0 %459  ;;  %vm536_vm7 = vcmp.eq.f32.partialorder %v456_v6, %v957_v28 }
  0xea   :  { %v619_v23 = vmin.f32 %v582_v22, 1e+30  ;;  %v363_v24 = vpop.f32.mrf.mxu1  ;;  %688 = vmin.xlane.f32.xlu0 %v665_v20  ;;  %v202_v25 = vpop.f32.mrf.mxu0  ;;  %v650_v29 = vmin.f32 %v634_v17, %v580_v21 }
  0xeb   :  { %v583_v33 = vsel %vm519_vm6, %v202_v25, 1e+30  ;;  %v585_v45 = vsel %vm521_vm9, %v363_v24, 1e+30  ;;  %vm535_vm6 = vcmp.eq.f32.partialorder %v456_v6, %v954_v27  ;;  %vm537_vm9 = vcmp.eq.f32.partialorder %v456_v6, %v961_v30 }
  0xec   :  { %v635_v34 = vmin.f32 %v619_v23, %v583_v33  ;;  %v206_v35 = vpop.f32.mrf.mxu0  ;;  %v367_v36 = vpop.f32.mrf.mxu1  ;;  %v666_v37 = vmin.f32 %v650_v29, %v581_v32 }
  0xed   :  { %v586_v39 = vsel %vm522_vm8, %v206_v35, 1e+30  ;;  %v588_v51 = vsel %vm524_vm11, %v367_v36, 1e+30  ;;  %vm538_vm8 = vcmp.eq.f32.partialorder %v460_v13, %v951_v26  ;;  %v464_v29 = vpop.permute.xlu1 %463  ;;  %vm540_vm11 = vcmp.eq.f32.partialorder %v460_v13, %v957_v28 }
  0xee   :  { %v620_v40 = vmin.f32 %v586_v39, 1e+30  ;;  %v369_v41 = vpop.f32.mrf.mxu1  ;;  %690 = vmin.xlane.f32.xlu1 %v666_v37  ;;  %v208_v42 = vpop.f32.mrf.mxu0  ;;  %v651_v43 = vmin.f32 %v635_v34, %v584_v38 }
  0xef   :  { %v587_v46 = vsel %vm523_vm10, %v208_v42, 1e+30  ;;  %v589_v58 = vsel %vm525_vm13, %v369_v41, 1e+30  ;;  %vm539_vm10 = vcmp.eq.f32.partialorder %v460_v13, %v954_v27  ;;  %vm541_vm13 = vcmp.eq.f32.partialorder %v460_v13, %v961_v30 }
  0xf0   :  { %v636_v47 = vmin.f32 %v620_v40, %v587_v46  ;;  %v212_v48 = vpop.f32.mrf.mxu0  ;;  %v373_v49 = vpop.f32.mrf.mxu1  ;;  %v667_v50 = vmin.f32 %v651_v43, %v585_v45 }
  0xf1   :  { %v590_v52 = vsel %vm526_vm12, %v212_v48, 1e+30  ;;  %v592_v0 = vsel %vm528_vm15, %v373_v49, 1e+30  ;;  %vm542_vm12 = vcmp.eq.f32.partialorder %v464_v29, %v951_v26  ;;  %vm544_vm15 = vcmp.eq.f32.partialorder %v464_v29, %v957_v28 }
  0xf2   :  { %v621_v53 = vmin.f32 %v590_v52, 1e+30  ;;  %v375_v54 = vpop.f32.mrf.mxu1  ;;  %692 = vmin.xlane.f32.xlu0 %v667_v50  ;;  %v214_v55 = vpop.f32.mrf.mxu0  ;;  %v652_v56 = vmin.f32 %v636_v47, %v588_v51 }
  0xf3   :  { %v591_v59 = vsel %vm527_vm14, %v214_v55, 1e+30  ;;  %v593_v7 = vsel %vm529_vm1, %v375_v54, 1e+30  ;;  %vm543_vm14 = vcmp.eq.f32.partialorder %v464_v29, %v954_v27  ;;  %vm738_vm1 = vcmask 7168  }
  0xf4   :  { %v637_v60 = vmin.f32 %v621_v53, %v591_v59  ;;  %v218_v61 = vpop.f32.mrf.mxu0  ;;  %v379_v62 = vpop.f32.mrf.mxu1  ;;  %v668_v63 = vmin.f32 %v652_v56, %v589_v58  ;;  %v798_v27 = vmov 0  }
  0xf5   :  { %v594_v1 = vsel %vm530_vm0, %v218_v61, 1e+30  ;;  %v596_v14 = vsel %vm532_vm3, %v379_v62, 1e+30  ;;  %vm545_vm0 = vcmp.eq.f32.partialorder %v464_v29, %v961_v30 }
  0xf6   :  { %v622_v2 = vmin.f32 %v594_v1, 1e+30  ;;  %v381_v3 = vpop.f32.mrf.mxu1  ;;  %694 = vmin.xlane.f32.xlu1 %v668_v63  ;;  %v220_v4 = vpop.f32.mrf.mxu0  ;;  %v653_v5 = vmin.f32 %v637_v60, %v592_v0 }
  0xf7   :  { %v595_v8 = vsel %vm531_vm2, %v220_v4, 1e+30  ;;  %v597_v20 = vsel %vm533_vm5, %v381_v3, 1e+30 }
  0xf8   :  { %v638_v9 = vmin.f32 %v622_v2, %v595_v8  ;;  %v224_v10 = vpop.f32.mrf.mxu0  ;;  %v385_v11 = vpop.f32.mrf.mxu1  ;;  %v669_v12 = vmin.f32 %v653_v5, %v593_v7 }
  0xf9   :  { %v598_v15 = vsel %vm534_vm4, %v224_v10, 1e+30  ;;  %v600_v31 = vsel %vm536_vm7, %v385_v11, 1e+30 }
  0xfa   :  { %v623_v16 = vmin.f32 %v598_v15, 1e+30  ;;  %v387_v17 = vpop.f32.mrf.mxu1  ;;  %696 = vmin.xlane.f32.xlu0 %v669_v12  ;;  %v226_v18 = vpop.f32.mrf.mxu0  ;;  %v654_v19 = vmin.f32 %v638_v9, %v596_v14 }
  0xfb   :  { %v599_v21 = vsel %vm535_vm6, %v226_v18, 1e+30  ;;  %v601_v37 = vsel %vm537_vm9, %v387_v17, 1e+30 }
  0xfc   :  { %v639_v22 = vmin.f32 %v623_v16, %v599_v21  ;;  %v230_v23 = vpop.f32.mrf.mxu0  ;;  %v391_v24 = vpop.f32.mrf.mxu1  ;;  %v670_v25 = vmin.f32 %v654_v19, %v597_v20 }
  0xfd   :  { %v602_v32 = vsel %vm538_vm8, %v230_v23, 1e+30  ;;  %v604_v43 = vsel %vm540_vm11, %v391_v24, 1e+30 }
  0xfe   :  { %v624_v33 = vmin.f32 %v602_v32, 1e+30  ;;  %v393_v34 = vpop.f32.mrf.mxu1  ;;  %698 = vmin.xlane.f32.xlu1 %v670_v25  ;;  %v232_v35 = vpop.f32.mrf.mxu0  ;;  %v655_v36 = vmin.f32 %v639_v22, %v600_v31 }
  0xff   :  { %v603_v38 = vsel %vm539_vm10, %v232_v35, 1e+30  ;;  %v605_v48 = vsel %vm541_vm13, %v393_v34, 1e+30 }
 0x100   :  { %v640_v39 = vmin.f32 %v624_v33, %v603_v38  ;;  %v236_v40 = vpop.f32.mrf.mxu0  ;;  %v397_v41 = vpop.f32.mrf.mxu1  ;;  %v671_v42 = vmin.f32 %v655_v36, %v601_v37 }
 0x101   :  { %v606_v44 = vsel %vm542_vm12, %v236_v40, 1e+30  ;;  %v608_v26 = vsel %vm544_vm15, %v397_v41, 1e+30 }
 0x102   :  { %v625_v45 = vmin.f32 %v606_v44, 1e+30  ;;  %700 = vmin.xlane.f32.xlu0 %v671_v42  ;;  %v238_v46 = vpop.f32.mrf.mxu0  ;;  %v656_v47 = vmin.f32 %v640_v39, %v604_v43  ;;  %v399_v50 = vpop.f32.mrf.mxu1 }
 0x103   :  { %v607_v49 = vsel %vm543_vm14, %v238_v46, 1e+30  ;;  %v609_v54 = vsel %vm545_vm0, %v399_v50, 1e+30 }
 0x104   :  { %v641_v51 = vmin.f32 %v625_v45, %v607_v49  ;;  %v672_v52 = vmin.f32 %v656_v47, %v605_v48 }
 0x106   :  { %702 = vmin.xlane.f32.xlu1 %v672_v52  ;;  %v657_v53 = vmin.f32 %v641_v51, %v608_v26 }
 0x108   :  { %v673_v55 = vmin.f32 %v657_v53, %v609_v54 }
 0x10a   :  { %704 = vmin.xlane.f32.xlu0 %v673_v55 }
 0x157   :  { %v675_v56 = vpop.xlane.xlu0 %674 }
 0x158   :  { %vm706_vm2 = vcmp.lt.f32.partialorder %v675_v56, 100.0 }
 0x159   :  { %v722_v57 = vsel %vm706_vm2, 1, %v798_v27 }
 0x15a   :  { %739 = vst.msk [vmem:[%s1102_s2] sm:$0xff] %vm738_vm1, %v722_v57 }
 0x15b   :  { %v677_v28 = vpop.xlane.xlu1 %676 }
 0x15c   :  { %vm707_vm3 = vcmp.lt.f32.partialorder %v677_v28, 100.0 }
 0x15d   :  { %v723_v58 = vsel %vm707_vm3, 1, %v798_v27 }
 0x15e   :  { %740 = vst.msk [vmem:[%s1102_s2 + $0x8] sm:$0xff] %vm738_vm1, %v723_v58 }
 0x15f   :  { %v679_v30 = vpop.xlane.xlu0 %678 }
 0x160   :  { %vm708_vm4 = vcmp.lt.f32.partialorder %v679_v30, 100.0 }
 0x161   :  { %v724_v59 = vsel %vm708_vm4, 1, %v798_v27 }
 0x162   :  { %741 = vst.msk [vmem:[%s1102_s2 + $0x10] sm:$0xff] %vm738_vm1, %v724_v59 }
 0x163   :  { %v681_v60 = vpop.xlane.xlu0 %680 }
 0x164   :  { %vm709_vm5 = vcmp.lt.f32.partialorder %v681_v60, 100.0 }
 0x165   :  { %v725_v61 = vsel %vm709_vm5, 1, %v798_v27 }
 0x166   :  { %742 = vst.msk [vmem:[%s1102_s2 + $0x18] sm:$0xff] %vm738_vm1, %v725_v61 }
 0x167   :  { %v683_v62 = vpop.xlane.xlu1 %682 }
 0x168   :  { %vm710_vm6 = vcmp.lt.f32.partialorder %v683_v62, 100.0 }
 0x169   :  { %v726_v63 = vsel %vm710_vm6, 1, %v798_v27 }
 0x16a   :  { %743 = vst.msk [vmem:[%s1102_s2 + $0x20] sm:$0xff] %vm738_vm1, %v726_v63 }
 0x16b   :  { %v685_v0 = vpop.xlane.xlu0 %684 }
 0x16c   :  { %vm711_vm7 = vcmp.lt.f32.partialorder %v685_v0, 100.0 }
 0x16d   :  { %v727_v1 = vsel %vm711_vm7, 1, %v798_v27 }
 0x16e   :  { %744 = vst.msk [vmem:[%s1102_s2 + $0x28] sm:$0xff] %vm738_vm1, %v727_v1 }
 0x16f   :  { %v687_v2 = vpop.xlane.xlu1 %686 }
 0x170   :  { %vm712_vm8 = vcmp.lt.f32.partialorder %v687_v2, 100.0 }
 0x171   :  { %v728_v3 = vsel %vm712_vm8, 1, %v798_v27 }
 0x172   :  { %745 = vst.msk [vmem:[%s1102_s2 + $0x30] sm:$0xff] %vm738_vm1, %v728_v3 }
 0x173   :  { %v689_v4 = vpop.xlane.xlu0 %688 }
 0x174   :  { %vm713_vm9 = vcmp.lt.f32.partialorder %v689_v4, 100.0 }
 0x175   :  { %v729_v5 = vsel %vm713_vm9, 1, %v798_v27 }
 0x176   :  { %746 = vst.msk [vmem:[%s1102_s2 + $0x38] sm:$0xff] %vm738_vm1, %v729_v5 }
 0x177   :  { %v691_v6 = vpop.xlane.xlu1 %690 }
 0x178   :  { %vm714_vm10 = vcmp.lt.f32.partialorder %v691_v6, 100.0 }
 0x179   :  { %v730_v7 = vsel %vm714_vm10, 1, %v798_v27 }
 0x17a   :  { %747 = vst.msk [vmem:[%s1102_s2 + $0x40] sm:$0xff] %vm738_vm1, %v730_v7 }
 0x17b   :  { %v693_v8 = vpop.xlane.xlu0 %692 }
 0x17c   :  { %vm715_vm11 = vcmp.lt.f32.partialorder %v693_v8, 100.0 }
 0x17d   :  { %v731_v9 = vsel %vm715_vm11, 1, %v798_v27 }
 0x17e   :  { %748 = vst.msk [vmem:[%s1102_s2 + $0x48] sm:$0xff] %vm738_vm1, %v731_v9 }
 0x17f   :  { %v695_v10 = vpop.xlane.xlu1 %694 }
 0x180   :  { %vm716_vm12 = vcmp.lt.f32.partialorder %v695_v10, 100.0 }
 0x181   :  { %v732_v11 = vsel %vm716_vm12, 1, %v798_v27 }
 0x182   :  { %749 = vst.msk [vmem:[%s1102_s2 + $0x50] sm:$0xff] %vm738_vm1, %v732_v11 }
 0x183   :  { %v697_v12 = vpop.xlane.xlu0 %696 }
 0x184   :  { %vm717_vm13 = vcmp.lt.f32.partialorder %v697_v12, 100.0 }
 0x185   :  { %v733_v13 = vsel %vm717_vm13, 1, %v798_v27 }
 0x186   :  { %750 = vst.msk [vmem:[%s1102_s2 + $0x58] sm:$0xff] %vm738_vm1, %v733_v13 }
 0x187   :  { %v699_v14 = vpop.xlane.xlu1 %698 }
 0x188   :  { %vm718_vm14 = vcmp.lt.f32.partialorder %v699_v14, 100.0 }
 0x189   :  { %v734_v15 = vsel %vm718_vm14, 1, %v798_v27 }
 0x18a   :  { %751 = vst.msk [vmem:[%s1102_s2 + $0x60] sm:$0xff] %vm738_vm1, %v734_v15 }
 0x18b   :  { %v701_v16 = vpop.xlane.xlu0 %700 }
 0x18c   :  { %vm719_vm15 = vcmp.lt.f32.partialorder %v701_v16, 100.0 }
 0x18d   :  { %v735_v17 = vsel %vm719_vm15, 1, %v798_v27 }
 0x18e   :  { %752 = vst.msk [vmem:[%s1102_s2 + $0x68] sm:$0xff] %vm738_vm1, %v735_v17 }
 0x18f   :  { %v703_v18 = vpop.xlane.xlu1 %702 }
 0x190   :  { %vm720_vm0 = vcmp.lt.f32.partialorder %v703_v18, 100.0 }
 0x191   :  { %v736_v19 = vsel %vm720_vm0, 1, %v798_v27 }
 0x192   :  { %753 = vst.msk [vmem:[%s1102_s2 + $0x70] sm:$0xff] %vm738_vm1, %v736_v19 }
 0x193   :  { %v705_v20 = vpop.xlane.xlu0 %704 }
 0x194   :  { %vm721_vm2 = vcmp.lt.f32.partialorder %v705_v20, 100.0 }
 0x195   :  { %v737_v21 = vsel %vm721_vm2, 1, %v798_v27 }
 0x196   :  { %754 = vst.msk [vmem:[%s1102_s2 + $0x78] sm:$0xff] %vm738_vm1, %v737_v21 }

</bundles_post_ra>
